<compile_context>
chip_gen: v7x
topology: tpu7x:2x2x1
jax: 0.10.0
libtpu: 0.0.40
codegen_flags: <defaults>
</compile_context>

<pallas_src>
import math
from functools import partial

import numpy as np
import jax
import jax.numpy as jnp
from jax.experimental import pallas as pl
from jax.experimental.pallas import tpu as pltpu

_EPS = 1e-5            # torch BatchNorm1d / LayerNorm default eps
_NEG_BIG = -1e30
_RATIO = 0.3
_GB = 8                # graphs per grid step in the fused pool kernel


def _round_up(x, m):
    return ((x + m - 1) // m) * m


# ---------------------------------------------------------------------------
# SAGPooling score = tanh( D^-1/2 (A + I_remaining) D^-1/2 X w + b )
#   Sparse O(E + N) edge aggregation in XLA (replaces the dense N x N matvec).
# ---------------------------------------------------------------------------
def gcn_score(x, src, dst, w_row, b):
    n = x.shape[0]
    xw = jnp.sum(x * w_row, axis=-1)                                   # [N] f32
    ones = jnp.ones(src.shape, jnp.float32)
    in_deg = jnp.zeros((n,), jnp.float32).at[dst].add(ones)
    self_cnt = jnp.zeros((n,), jnp.float32).at[dst].add(
        jnp.where(src == dst, 1.0, 0.0))
    no_self = (self_cnt <= 0.0).astype(jnp.float32)   # add_remaining_self_loops
    deg = in_deg + no_self
    dinv = jnp.where(deg > 0.0, jax.lax.rsqrt(deg), 0.0)
    # TODO(synk): data-dependent scatter-add aggregation stays in XLA; a Pallas
    # version would need CSR row offsets via scalar prefetch.
    neigh = jnp.zeros((n,), jnp.float32).at[dst].add(dinv[src] * xw[src])
    pre = dinv * (neigh + no_self * dinv * xw) + b[0]
    return jnp.tanh(pre)


# ---------------------------------------------------------------------------
# Fused kernel: per-graph max/mean/sum pooling + BatchNorm1d(eval) + LayerNorm
#   + Linear(F,Hp) + ReLU + Linear(Hp,F) + residual + LayerNorm.
#   Grid over blocks of GB graphs; pools laid out pool-major as a [3*GB, F]
#   slab so the MLP runs as two dense MXU matmuls.
# ---------------------------------------------------------------------------
def fused_pool_mlp_kernel(x_ref, k_ref, invk_ref,
                          bn_g_ref, bn_b_ref, bn_m_ref, bn_v_ref,
                          ln1_g_ref, ln1_b_ref, w11_ref, b11_ref,
                          w12_ref, b12_ref, ln2_g_ref, ln2_b_ref,
                          out_ref):
    xg = x_ref[...]                                       # [GB, MK, F] f32
    gb, mk, _ = xg.shape
    k = k_ref[...]                                        # [GB, 1] int32

    # Validity mask generated in-kernel (no HBM mask array).
    row = jax.lax.broadcasted_iota(jnp.int32, (gb, mk, 1), 1)
    valid = row < k[:, :, None]                           # [GB, MK, 1] bool
    vm = valid.astype(jnp.float32)

    # Streaming pools, O(F) per graph.
    sum_pool = jnp.sum(xg * vm, axis=1)                   # [GB, F]
    mean_pool = sum_pool * invk_ref[...]                  # 1/k precomputed
    max_raw = jnp.max(jnp.where(valid, xg, _NEG_BIG), axis=1)
    max_pool = jnp.where(k > 0, max_raw, 0.0)             # empty-graph guard

    # torch.stack((b1(gmp), b2(gap), b3(add)), dim=1), laid out pool-major.
    pools = jnp.concatenate([max_pool, mean_pool, sum_pool], axis=0)   # [3*GB, F]

    # BatchNorm1d (eval mode) — params pre-expanded to [3*GB, F] in the wrapper.
    h0 = (pools - bn_m_ref[...]) * jax.lax.rsqrt(bn_v_ref[...] + _EPS) \
         * bn_g_ref[...] + bn_b_ref[...]

    # LayerNorm bf1
    mu = jnp.mean(h0, axis=-1, keepdims=True)
    var = jnp.mean((h0 - mu) ** 2, axis=-1, keepdims=True)
    h = (h0 - mu) * jax.lax.rsqrt(var + _EPS) * ln1_g_ref[...] + ln1_b_ref[...]

    # Linear(F, Hp) -> ReLU -> Linear(Hp, F)   (Hp = hidden zero-padded to 128)
    z = jnp.dot(h, w11_ref[...], preferred_element_type=jnp.float32) + b11_ref[...]
    z = jnp.maximum(z, 0.0)
    z = jnp.dot(z, w12_ref[...], preferred_element_type=jnp.float32) + b12_ref[...]

    # residual + LayerNorm bf11
    r = z + h0
    mu2 = jnp.mean(r, axis=-1, keepdims=True)
    var2 = jnp.mean((r - mu2) ** 2, axis=-1, keepdims=True)
    y = (r - mu2) * jax.lax.rsqrt(var2 + _EPS) * ln2_g_ref[...] + ln2_b_ref[...]

    # pool-major [3*GB, F] -> output block [3, GB, F] (8-row aligned slices)
    for p in range(3):
        out_ref[p] = y[p * gb:(p + 1) * gb, :]


def fused_pool_mlp(x_sel, k_col, invk_col, p, gb=_GB):
    g_pad, mk, f = x_sel.shape
    assert g_pad % gb == 0
    nblk = g_pad // gb
    hp = p["w11p"].shape[1]

    # BN params broadcast to the pool-major slab layout
    # (rows 0..gb-1: max/b1, gb..2gb-1: mean/b2, 2gb..3gb-1: sum/b3).
    bn_g = jnp.repeat(p["bn_gamma"], gb, axis=0)
    bn_b = jnp.repeat(p["bn_beta"], gb, axis=0)
    bn_m = jnp.repeat(p["bn_mean"], gb, axis=0)
    bn_v = jnp.repeat(p["bn_var"], gb, axis=0)

    def rp(shape):                     # resident parameter (same block every step)
        return pl.BlockSpec(shape, lambda i: (0, 0))

    fp = _round_up(f, 128)
    mkp = _round_up(mk, 8)
    est = 2 * (gb * mkp * fp * 4                      # x_sel (double-buffered)
               + 3 * gb * fp * 4                      # output
               + (4 * 3 * gb * fp + 6 * fp + fp * hp + hp + hp * fp) * 4
               + 2 * gb * 128 * 4)                    # k / inv_k columns
    cp = pltpu.CompilerParams(
        dimension_semantics=("parallel",),
        vmem_limit_bytes=int(min(max(est + (2 << 20), 8 << 20), 48 << 20)))

    return pl.pallas_call(
        fused_pool_mlp_kernel,
        out_shape=jax.ShapeDtypeStruct((3, g_pad, f), jnp.float32),
        grid=(nblk,),
        in_specs=[
            pl.BlockSpec((gb, mk, f), lambda i: (i, 0, 0)),     # x_sel block
            pl.BlockSpec((gb, 1), lambda i: (i, 0)),            # k per graph
            pl.BlockSpec((gb, 1), lambda i: (i, 0)),            # 1/k per graph
            rp((3 * gb, f)), rp((3 * gb, f)), rp((3 * gb, f)), rp((3 * gb, f)),
            rp((1, f)), rp((1, f)),                             # LN1
            rp((f, hp)), rp((1, hp)),                           # l11 (lane-padded)
            rp((hp, f)), rp((1, f)),                            # l12 (lane-padded), b12
            rp((1, f)), rp((1, f)),                             # LN2
        ],
        out_specs=pl.BlockSpec((3, gb, f), lambda i: (0, i, 0)),
        compiler_params=cp,
    )(x_sel, k_col, invk_col,
      bn_g, bn_b, bn_m, bn_v,
      p["ln1_g"], p["ln1_b"], p["w11p"], p["b11p"], p["w12p"], p["b12"],
      p["ln2_g"], p["ln2_b"])


# ---------------------------------------------------------------------------
# Device-side forward (jitted): score -> top-k select -> fused pool/MLP kernel
# ---------------------------------------------------------------------------
@partial(jax.jit, static_argnames=("num_graphs", "gb"))
def _forward_device(params, x, src, dst, batch_i32, srow, k_col, invk_col,
                    num_graphs, gb):
    n, f = x.shape
    g_pad, max_k = srow.shape

    score = gcn_score(x, src, dst, params["gcn_w"], params["gcn_b"])    # [N] f32

    # Per-graph top-k, fully on device: sort by (batch asc, score desc, idx asc);
    # the first k_g entries of each graph's run are exactly its top-k nodes.
    order = jnp.lexsort((jnp.arange(n, dtype=jnp.int32), -score, batch_i32))
    sel_idx = jnp.take(order, srow.reshape(-1))
    # TODO(synk): the [G_pad, max_k, F] gather is materialized in HBM; fusing it
    # into the pool kernel via scalar-prefetched row indices would remove one
    # HBM round trip.
    x_sel = jnp.take(x, sel_idx, axis=0).reshape(g_pad, max_k, f)

    out3 = fused_pool_mlp(x_sel, k_col, invk_col, params, gb)           # [3,Gp,F]
    return jnp.transpose(out3, (1, 0, 2))[:num_graphs]                  # [G,3,F]


def multi_pooling_module2(params, x, edge_index, batch, gb=_GB):
    x = jnp.asarray(x, jnp.float32)
    n, _ = x.shape
    batch_np = np.asarray(batch).astype(np.int64)
    num_graphs = int(batch_np.max()) + 1
    gb = max(8, _round_up(int(gb), 8))

    # ---- static per-graph bookkeeping (graph STRUCTURE only, no data sync) ----
    counts = np.bincount(batch_np, minlength=num_graphs)
    offsets = np.concatenate([[0], np.cumsum(counts)[:-1]]).astype(np.int64)
    k = np.where(counts > 0, np.ceil(_RATIO * counts), 0).astype(np.int64)
    max_k = max(int(k.max()), 1)
    g_pad = _round_up(max(num_graphs, gb), gb)

    srow = np.zeros((g_pad, max_k), np.int32)
    srow[:num_graphs] = np.minimum(
        offsets[:, None] + np.arange(max_k)[None, :], n - 1).astype(np.int32)
    k_col = np.zeros((g_pad, 1), np.int32)
    k_col[:num_graphs, 0] = k
    invk_col = np.zeros((g_pad, 1), np.float32)
    invk_col[:num_graphs, 0] = 1.0 / np.maximum(k, 1)

    src = jnp.asarray(np.asarray(edge_index[0]), jnp.int32)
    dst = jnp.asarray(np.asarray(edge_index[1]), jnp.int32)
    return _forward_device(params, x, src, dst,
                           jnp.asarray(batch_np.astype(np.int32)),
                           jnp.asarray(srow), jnp.asarray(k_col),
                           jnp.asarray(invk_col), num_graphs, gb)


# ---------------------------------------------------------------------------
# Deterministic parameter init (shapes from MultiPoolingModule2.__init__)
# ---------------------------------------------------------------------------
def init_params(key, num_features):
    ks = jax.random.split(key, 13)
    f = num_features
    p = {}
    # GCNConv(num_features, 1) inside SAGPooling — weight stored row-form [1, F]
    p["gcn_w"] = jax.random.normal(ks[0], (1, f), jnp.float32) / math.sqrt(f)
    p["gcn_b"] = jnp.full((1,), 0.01, jnp.float32)
    # BatchNorm1d b1 (max), b2 (mean), b3 (sum) — eval-mode running stats
    p["bn_gamma"] = 1.0 + 0.1 * jax.random.normal(ks[1], (3, f), jnp.float32)
    p["bn_beta"] = 0.1 * jax.random.normal(ks[2], (3, f), jnp.float32)
    p["bn_mean"] = 0.1 * jax.random.normal(ks[3], (3, f), jnp.float32)
    p["bn_var"] = 1.0 + 0.1 * jax.random.uniform(ks[4], (3, f), jnp.float32)
    # LayerNorm bf1
    p["ln1_g"] = 1.0 + 0.05 * jax.random.normal(ks[5], (1, f), jnp.float32)
    p["ln1_b"] = 0.05 * jax.random.normal(ks[6], (1, f), jnp.float32)
    # Linear l11: F -> 64 (stored [F, 64] = W^T); Linear l12: 64 -> F
    w11 = jax.random.normal(ks[7], (f, 64), jnp.float32) / math.sqrt(f)
    b11 = 0.05 * jax.random.normal(ks[8], (1, 64), jnp.float32)
    w12 = jax.random.normal(ks[9], (64, f), jnp.float32) / math.sqrt(64)
    p["b12"] = 0.05 * jax.random.normal(ks[10], (1, f), jnp.float32)
    # LayerNorm bf11
    p["ln2_g"] = 1.0 + 0.05 * jax.random.normal(ks[11], (1, f), jnp.float32)
    p["ln2_b"] = 0.05 * jax.random.normal(ks[12], (1, f), jnp.float32)
    # Hidden (64) zero-padded ONCE to 128 lanes here (hoisted out of forward);
    # mathematically identical output.
    hp = _round_up(64, 128)
    p["w11p"] = jnp.zeros((f, hp), jnp.float32).at[:, :64].set(w11)
    p["b11p"] = jnp.zeros((1, hp), jnp.float32).at[:, :64].set(b11)
    p["w12p"] = jnp.zeros((hp, f), jnp.float32).at[:64, :].set(w12)
    # note: b4, b5, l1 exist in __init__ but are unused in forward.
    return p


if __name__ == "__main__":
    key = jax.random.PRNGKey(0)
    k_param, k_x = jax.random.split(key)

    num_features = 54          # MultiPoolingModule2(54), as used by mu1/mu2/mu3
    nodes_per_graph = 10
    num_graphs = 2
    num_nodes = nodes_per_graph * num_graphs

    params = init_params(k_param, num_features)
    x = jax.random.normal(k_x, (num_nodes, num_features), jnp.float32)

    # simple undirected ring graph per batch element (edges stored both directions)
    edges = []
    for g in range(num_graphs):
        base = g * nodes_per_graph
        for i in range(nodes_per_graph):
            j = (i + 1) % nodes_per_graph
            edges.append((base + i, base + j))
            edges.append((base + j, base + i))
    edge_index = np.array(edges, dtype=np.int32).T          # [2, E]
    batch = np.repeat(np.arange(num_graphs, dtype=np.int32), nodes_per_graph)

    out = multi_pooling_module2(params, x, edge_index, batch)
    out = jax.block_until_ready(out)
    assert out.shape == (num_graphs, 3, num_features)
    assert bool(jnp.all(jnp.isfinite(out)))
    print("KERNEL_OK")
</pallas_src>

<mosaic_0001>
module attributes {stable_mosaic.version = 11 : i64} {
  func.func @fused_pool_mlp_kernel(%arg0: i32, %arg1: memref<8x3x54xf32, #tpu.memory_space<vmem>>, %arg2: memref<8x1xi32, #tpu.memory_space<vmem>>, %arg3: memref<8x1xf32, #tpu.memory_space<vmem>>, %arg4: memref<24x54xf32, #tpu.memory_space<vmem>>, %arg5: memref<24x54xf32, #tpu.memory_space<vmem>>, %arg6: memref<24x54xf32, #tpu.memory_space<vmem>>, %arg7: memref<24x54xf32, #tpu.memory_space<vmem>>, %arg8: memref<1x54xf32, #tpu.memory_space<vmem>>, %arg9: memref<1x54xf32, #tpu.memory_space<vmem>>, %arg10: memref<54x128xf32, #tpu.memory_space<vmem>>, %arg11: memref<1x128xf32, #tpu.memory_space<vmem>>, %arg12: memref<128x54xf32, #tpu.memory_space<vmem>>, %arg13: memref<1x54xf32, #tpu.memory_space<vmem>>, %arg14: memref<1x54xf32, #tpu.memory_space<vmem>>, %arg15: memref<1x54xf32, #tpu.memory_space<vmem>>, %arg16: memref<3x8x54xf32, #tpu.memory_space<vmem>>) attributes {dimension_semantics = [#tpu.dimension_semantics<parallel>], iteration_bounds = array<i64: 1>, scalar_prefetch = 0 : i64, scratch_operands = 0 : i64, tpu.core_type = #tpu.core_type<tc>, window_params = [{transform_indices = @transform_0, window_bounds = array<i64: 8, 3, 54>}, {transform_indices = @transform_1, window_bounds = array<i64: 8, 1>}, {transform_indices = @transform_2, window_bounds = array<i64: 8, 1>}, {pipeline_mode = #tpu.pipeline_mode<synchronous>, transform_indices = @transform_3, window_bounds = array<i64: 24, 54>}, {pipeline_mode = #tpu.pipeline_mode<synchronous>, transform_indices = @transform_4, window_bounds = array<i64: 24, 54>}, {pipeline_mode = #tpu.pipeline_mode<synchronous>, transform_indices = @transform_5, window_bounds = array<i64: 24, 54>}, {pipeline_mode = #tpu.pipeline_mode<synchronous>, transform_indices = @transform_6, window_bounds = array<i64: 24, 54>}, {pipeline_mode = #tpu.pipeline_mode<synchronous>, transform_indices = @transform_7, window_bounds = array<i64: 1, 54>}, {pipeline_mode = #tpu.pipeline_mode<synchronous>, transform_indices = @transform_8, window_bounds = array<i64: 1, 54>}, {pipeline_mode = #tpu.pipeline_mode<synchronous>, transform_indices = @transform_9, window_bounds = array<i64: 54, 128>}, {pipeline_mode = #tpu.pipeline_mode<synchronous>, transform_indices = @transform_10, window_bounds = array<i64: 1, 128>}, {pipeline_mode = #tpu.pipeline_mode<synchronous>, transform_indices = @transform_11, window_bounds = array<i64: 128, 54>}, {pipeline_mode = #tpu.pipeline_mode<synchronous>, transform_indices = @transform_12, window_bounds = array<i64: 1, 54>}, {pipeline_mode = #tpu.pipeline_mode<synchronous>, transform_indices = @transform_13, window_bounds = array<i64: 1, 54>}, {pipeline_mode = #tpu.pipeline_mode<synchronous>, transform_indices = @transform_14, window_bounds = array<i64: 1, 54>}, {transform_indices = @transform_15, window_bounds = array<i64: 3, 8, 54>}]} {
    %c0 = arith.constant 0 : index
    %c0_0 = arith.constant 0 : index
    %c0_1 = arith.constant 0 : index
    %0 = vector.load %arg1[%c0, %c0_0, %c0_1] : memref<8x3x54xf32, #tpu.memory_space<vmem>>, vector<8x3x54xf32>
    %c0_2 = arith.constant 0 : index
    %c0_3 = arith.constant 0 : index
    %1 = vector.load %arg2[%c0_2, %c0_3] : memref<8x1xi32, #tpu.memory_space<vmem>>, vector<8x1xi32>
    %2 = tpu.iota {dimensions = array<i32: 1>} : vector<8x3x1xi32>
    %3 = vector.shape_cast %1 : vector<8x1xi32> to vector<8x1x1xi32>
    %4 = vector.broadcast %3 : vector<8x1x1xi32> to vector<8x3x1xi32>
    %5 = arith.cmpi slt, %2, %4 : vector<8x3x1xi32>
    %6 = arith.extui %5 : vector<8x3x1xi1> to vector<8x3x1xi32>
    %7 = arith.sitofp %6 : vector<8x3x1xi32> to vector<8x3x1xf32>
    %8 = vector.broadcast %7 : vector<8x3x1xf32> to vector<8x3x54xf32>
    %9 = arith.mulf %0, %8 : vector<8x3x54xf32>
    %cst = arith.constant dense<0.000000e+00> : vector<8x54xf32>
    %10 = vector.multi_reduction <add>, %9, %cst [1] : vector<8x3x54xf32> to vector<8x54xf32>
    %c0_4 = arith.constant 0 : index
    %c0_5 = arith.constant 0 : index
    %11 = vector.load %arg3[%c0_4, %c0_5] : memref<8x1xf32, #tpu.memory_space<vmem>>, vector<8x1xf32>
    %12 = vector.broadcast %11 : vector<8x1xf32> to vector<8x54xf32>
    %13 = arith.mulf %10, %12 : vector<8x54xf32>
    %cst_6 = arith.constant -1.000000e+30 : f32
    %14 = vector.shape_cast %5 : vector<8x3x1xi1> to vector<8x3x1xi1>
    %15 = vector.broadcast %14 : vector<8x3x1xi1> to vector<8x3x54xi1>
    %16 = vector.broadcast %cst_6 : f32 to vector<8x3x54xf32>
    %17 = arith.select %15, %0, %16 : vector<8x3x54xi1>, vector<8x3x54xf32>
    %cst_7 = arith.constant dense<0xFF800000> : vector<8x54xf32>
    %18 = vector.multi_reduction <maximumf>, %17, %cst_7 [1] : vector<8x3x54xf32> to vector<8x54xf32>
    %c0_i32 = arith.constant 0 : i32
    %19 = vector.broadcast %c0_i32 : i32 to vector<8x1xi32>
    %20 = arith.cmpi sgt, %1, %19 : vector<8x1xi32>
    %cst_8 = arith.constant 0.000000e+00 : f32
    %21 = vector.shape_cast %20 : vector<8x1xi1> to vector<8x1xi1>
    %22 = vector.broadcast %21 : vector<8x1xi1> to vector<8x54xi1>
    %23 = vector.broadcast %cst_8 : f32 to vector<8x54xf32>
    %24 = arith.select %22, %18, %23 : vector<8x54xi1>, vector<8x54xf32>
    %25 = tpu.concatenate %24, %13, %10 in 0 : vector<8x54xf32>, vector<8x54xf32>, vector<8x54xf32> -> vector<24x54xf32>
    %c0_9 = arith.constant 0 : index
    %c0_10 = arith.constant 0 : index
    %26 = vector.load %arg6[%c0_9, %c0_10] : memref<24x54xf32, #tpu.memory_space<vmem>>, vector<24x54xf32>
    %27 = arith.subf %25, %26 : vector<24x54xf32>
    %c0_11 = arith.constant 0 : index
    %c0_12 = arith.constant 0 : index
    %28 = vector.load %arg7[%c0_11, %c0_12] : memref<24x54xf32, #tpu.memory_space<vmem>>, vector<24x54xf32>
    %cst_13 = arith.constant 9.99999974E-6 : f32
    %29 = vector.broadcast %cst_13 : f32 to vector<24x54xf32>
    %30 = arith.addf %28, %29 : vector<24x54xf32>
    %31 = math.rsqrt %30 : vector<24x54xf32>
    %32 = arith.mulf %27, %31 : vector<24x54xf32>
    %c0_14 = arith.constant 0 : index
    %c0_15 = arith.constant 0 : index
    %33 = vector.load %arg4[%c0_14, %c0_15] : memref<24x54xf32, #tpu.memory_space<vmem>>, vector<24x54xf32>
    %34 = arith.mulf %32, %33 : vector<24x54xf32>
    %c0_16 = arith.constant 0 : index
    %c0_17 = arith.constant 0 : index
    %35 = vector.load %arg5[%c0_16, %c0_17] : memref<24x54xf32, #tpu.memory_space<vmem>>, vector<24x54xf32>
    %36 = arith.addf %34, %35 : vector<24x54xf32>
    %cst_18 = arith.constant dense<0.000000e+00> : vector<24xf32>
    %37 = vector.multi_reduction <add>, %36, %cst_18 [1] : vector<24x54xf32> to vector<24xf32>
    %38 = vector.shape_cast %37 : vector<24xf32> to vector<24x1xf32>
    %cst_19 = arith.constant 5.400000e+01 : f32
    %39 = vector.broadcast %cst_19 : f32 to vector<24x1xf32>
    %40 = arith.divf %38, %39 : vector<24x1xf32>
    %41 = vector.broadcast %40 : vector<24x1xf32> to vector<24x54xf32>
    %42 = arith.subf %36, %41 : vector<24x54xf32>
    %43 = arith.mulf %42, %42 : vector<24x54xf32>
    %cst_20 = arith.constant dense<0.000000e+00> : vector<24xf32>
    %44 = vector.multi_reduction <add>, %43, %cst_20 [1] : vector<24x54xf32> to vector<24xf32>
    %45 = vector.shape_cast %44 : vector<24xf32> to vector<24x1xf32>
    %cst_21 = arith.constant 5.400000e+01 : f32
    %46 = vector.broadcast %cst_21 : f32 to vector<24x1xf32>
    %47 = arith.divf %45, %46 : vector<24x1xf32>
    %48 = vector.broadcast %40 : vector<24x1xf32> to vector<24x54xf32>
    %49 = arith.subf %36, %48 : vector<24x54xf32>
    %cst_22 = arith.constant 9.99999974E-6 : f32
    %50 = vector.broadcast %cst_22 : f32 to vector<24x1xf32>
    %51 = arith.addf %47, %50 : vector<24x1xf32>
    %52 = math.rsqrt %51 : vector<24x1xf32>
    %53 = vector.broadcast %52 : vector<24x1xf32> to vector<24x54xf32>
    %54 = arith.mulf %49, %53 : vector<24x54xf32>
    %c0_23 = arith.constant 0 : index
    %c0_24 = arith.constant 0 : index
    %55 = vector.load %arg8[%c0_23, %c0_24] : memref<1x54xf32, #tpu.memory_space<vmem>>, vector<1x54xf32>
    %56 = vector.broadcast %55 : vector<1x54xf32> to vector<24x54xf32>
    %57 = arith.mulf %54, %56 : vector<24x54xf32>
    %c0_25 = arith.constant 0 : index
    %c0_26 = arith.constant 0 : index
    %58 = vector.load %arg9[%c0_25, %c0_26] : memref<1x54xf32, #tpu.memory_space<vmem>>, vector<1x54xf32>
    %59 = vector.broadcast %58 : vector<1x54xf32> to vector<24x54xf32>
    %60 = arith.addf %57, %59 : vector<24x54xf32>
    %c0_27 = arith.constant 0 : index
    %c0_28 = arith.constant 0 : index
    %61 = vector.load %arg10[%c0_27, %c0_28] : memref<54x128xf32, #tpu.memory_space<vmem>>, vector<54x128xf32>
    %cst_29 = arith.constant dense<0.000000e+00> : vector<24x128xf32>
    %62 = tpu.matmul %60, %61, %cst_29 {dimension_numbers = #tpu.dot_dimension_numbers<[1], [0], [0], [1], [0, 0, 1, 1], [], []>} : vector<24x54xf32>, vector<54x128xf32>, vector<24x128xf32> -> vector<24x128xf32>
    %c0_30 = arith.constant 0 : index
    %c0_31 = arith.constant 0 : index
    %63 = vector.load %arg11[%c0_30, %c0_31] : memref<1x128xf32, #tpu.memory_space<vmem>>, vector<1x128xf32>
    %64 = vector.broadcast %63 : vector<1x128xf32> to vector<24x128xf32>
    %65 = arith.addf %62, %64 : vector<24x128xf32>
    %cst_32 = arith.constant 0.000000e+00 : f32
    %66 = vector.broadcast %cst_32 : f32 to vector<24x128xf32>
    %67 = arith.maximumf %65, %66 : vector<24x128xf32>
    %c0_33 = arith.constant 0 : index
    %c0_34 = arith.constant 0 : index
    %68 = vector.load %arg12[%c0_33, %c0_34] : memref<128x54xf32, #tpu.memory_space<vmem>>, vector<128x54xf32>
    %cst_35 = arith.constant dense<0.000000e+00> : vector<24x54xf32>
    %69 = tpu.matmul %67, %68, %cst_35 {dimension_numbers = #tpu.dot_dimension_numbers<[1], [0], [0], [1], [0, 0, 1, 1], [], []>} : vector<24x128xf32>, vector<128x54xf32>, vector<24x54xf32> -> vector<24x54xf32>
    %c0_36 = arith.constant 0 : index
    %c0_37 = arith.constant 0 : index
    %70 = vector.load %arg13[%c0_36, %c0_37] : memref<1x54xf32, #tpu.memory_space<vmem>>, vector<1x54xf32>
    %71 = vector.broadcast %70 : vector<1x54xf32> to vector<24x54xf32>
    %72 = arith.addf %69, %71 : vector<24x54xf32>
    %73 = arith.addf %72, %36 : vector<24x54xf32>
    %cst_38 = arith.constant dense<0.000000e+00> : vector<24xf32>
    %74 = vector.multi_reduction <add>, %73, %cst_38 [1] : vector<24x54xf32> to vector<24xf32>
    %75 = vector.shape_cast %74 : vector<24xf32> to vector<24x1xf32>
    %cst_39 = arith.constant 5.400000e+01 : f32
    %76 = vector.broadcast %cst_39 : f32 to vector<24x1xf32>
    %77 = arith.divf %75, %76 : vector<24x1xf32>
    %78 = vector.broadcast %77 : vector<24x1xf32> to vector<24x54xf32>
    %79 = arith.subf %73, %78 : vector<24x54xf32>
    %80 = arith.mulf %79, %79 : vector<24x54xf32>
    %cst_40 = arith.constant dense<0.000000e+00> : vector<24xf32>
    %81 = vector.multi_reduction <add>, %80, %cst_40 [1] : vector<24x54xf32> to vector<24xf32>
    %82 = vector.shape_cast %81 : vector<24xf32> to vector<24x1xf32>
    %cst_41 = arith.constant 5.400000e+01 : f32
    %83 = vector.broadcast %cst_41 : f32 to vector<24x1xf32>
    %84 = arith.divf %82, %83 : vector<24x1xf32>
    %85 = vector.broadcast %77 : vector<24x1xf32> to vector<24x54xf32>
    %86 = arith.subf %73, %85 : vector<24x54xf32>
    %cst_42 = arith.constant 9.99999974E-6 : f32
    %87 = vector.broadcast %cst_42 : f32 to vector<24x1xf32>
    %88 = arith.addf %84, %87 : vector<24x1xf32>
    %89 = math.rsqrt %88 : vector<24x1xf32>
    %90 = vector.broadcast %89 : vector<24x1xf32> to vector<24x54xf32>
    %91 = arith.mulf %86, %90 : vector<24x54xf32>
    %c0_43 = arith.constant 0 : index
    %c0_44 = arith.constant 0 : index
    %92 = vector.load %arg14[%c0_43, %c0_44] : memref<1x54xf32, #tpu.memory_space<vmem>>, vector<1x54xf32>
    %93 = vector.broadcast %92 : vector<1x54xf32> to vector<24x54xf32>
    %94 = arith.mulf %91, %93 : vector<24x54xf32>
    %c0_45 = arith.constant 0 : index
    %c0_46 = arith.constant 0 : index
    %95 = vector.load %arg15[%c0_45, %c0_46] : memref<1x54xf32, #tpu.memory_space<vmem>>, vector<1x54xf32>
    %96 = vector.broadcast %95 : vector<1x54xf32> to vector<24x54xf32>
    %97 = arith.addf %94, %96 : vector<24x54xf32>
    %98 = vector.extract_strided_slice %97 {offsets = [0, 0], sizes = [8, 54], strides = [1, 1]} : vector<24x54xf32> to vector<8x54xf32>
    %c0_47 = arith.constant 0 : index
    %c0_48 = arith.constant 0 : index
    %c0_49 = arith.constant 0 : index
    %99 = vector.load %arg16[%c0_47, %c0_48, %c0_49] : memref<3x8x54xf32, #tpu.memory_space<vmem>>, vector<1x8x54xf32>
    %100 = vector.shape_cast %99 : vector<1x8x54xf32> to vector<8x54xf32>
    %101 = vector.shape_cast %98 : vector<8x54xf32> to vector<1x8x54xf32>
    tpu.vector_store %arg16[%c0_47, %c0_48, %c0_49], %101 {strides = array<i32>} : memref<3x8x54xf32, #tpu.memory_space<vmem>>, vector<1x8x54xf32>,
    %102 = vector.extract_strided_slice %97 {offsets = [8, 0], sizes = [8, 54], strides = [1, 1]} : vector<24x54xf32> to vector<8x54xf32>
    %c1 = arith.constant 1 : index
    %c0_50 = arith.constant 0 : index
    %c0_51 = arith.constant 0 : index
    %103 = vector.load %arg16[%c1, %c0_50, %c0_51] : memref<3x8x54xf32, #tpu.memory_space<vmem>>, vector<1x8x54xf32>
    %104 = vector.shape_cast %103 : vector<1x8x54xf32> to vector<8x54xf32>
    %105 = vector.shape_cast %102 : vector<8x54xf32> to vector<1x8x54xf32>
    tpu.vector_store %arg16[%c1, %c0_50, %c0_51], %105 {strides = array<i32>} : memref<3x8x54xf32, #tpu.memory_space<vmem>>, vector<1x8x54xf32>,
    %106 = vector.extract_strided_slice %97 {offsets = [16, 0], sizes = [8, 54], strides = [1, 1]} : vector<24x54xf32> to vector<8x54xf32>
    %c2 = arith.constant 2 : index
    %c0_52 = arith.constant 0 : index
    %c0_53 = arith.constant 0 : index
    %107 = vector.load %arg16[%c2, %c0_52, %c0_53] : memref<3x8x54xf32, #tpu.memory_space<vmem>>, vector<1x8x54xf32>
    %108 = vector.shape_cast %107 : vector<1x8x54xf32> to vector<8x54xf32>
    %109 = vector.shape_cast %106 : vector<8x54xf32> to vector<1x8x54xf32>
    tpu.vector_store %arg16[%c2, %c0_52, %c0_53], %109 {strides = array<i32>} : memref<3x8x54xf32, #tpu.memory_space<vmem>>, vector<1x8x54xf32>,
    return
  }
  func.func @transform_0(%arg0: i32) -> (i32, i32, i32) {
    %c0_i32 = arith.constant 0 : i32
    %c0_i32_0 = arith.constant 0 : i32
    %c0_i32_1 = arith.constant 0 : i32
    return %arg0, %c0_i32, %c0_i32_0 : i32, i32, i32
  }
  func.func @transform_1(%arg0: i32) -> (i32, i32) {
    %c0_i32 = arith.constant 0 : i32
    %c0_i32_0 = arith.constant 0 : i32
    return %arg0, %c0_i32 : i32, i32
  }
  func.func @transform_2(%arg0: i32) -> (i32, i32) {
    %c0_i32 = arith.constant 0 : i32
    %c0_i32_0 = arith.constant 0 : i32
    return %arg0, %c0_i32 : i32, i32
  }
  func.func @transform_3(%arg0: i32) -> (i32, i32) {
    %c0_i32 = arith.constant 0 : i32
    %c0_i32_0 = arith.constant 0 : i32
    %c0_i32_1 = arith.constant 0 : i32
    return %c0_i32, %c0_i32_0 : i32, i32
  }
  func.func @transform_4(%arg0: i32) -> (i32, i32) {
    %c0_i32 = arith.constant 0 : i32
    %c0_i32_0 = arith.constant 0 : i32
    %c0_i32_1 = arith.constant 0 : i32
    return %c0_i32, %c0_i32_0 : i32, i32
  }
  func.func @transform_5(%arg0: i32) -> (i32, i32) {
    %c0_i32 = arith.constant 0 : i32
    %c0_i32_0 = arith.constant 0 : i32
    %c0_i32_1 = arith.constant 0 : i32
    return %c0_i32, %c0_i32_0 : i32, i32
  }
  func.func @transform_6(%arg0: i32) -> (i32, i32) {
    %c0_i32 = arith.constant 0 : i32
    %c0_i32_0 = arith.constant 0 : i32
    %c0_i32_1 = arith.constant 0 : i32
    return %c0_i32, %c0_i32_0 : i32, i32
  }
  func.func @transform_7(%arg0: i32) -> (i32, i32) {
    %c0_i32 = arith.constant 0 : i32
    %c0_i32_0 = arith.constant 0 : i32
    %c0_i32_1 = arith.constant 0 : i32
    return %c0_i32, %c0_i32_0 : i32, i32
  }
  func.func @transform_8(%arg0: i32) -> (i32, i32) {
    %c0_i32 = arith.constant 0 : i32
    %c0_i32_0 = arith.constant 0 : i32
    %c0_i32_1 = arith.constant 0 : i32
    return %c0_i32, %c0_i32_0 : i32, i32
  }
  func.func @transform_9(%arg0: i32) -> (i32, i32) {
    %c0_i32 = arith.constant 0 : i32
    %c0_i32_0 = arith.constant 0 : i32
    %c0_i32_1 = arith.constant 0 : i32
    return %c0_i32, %c0_i32_0 : i32, i32
  }
  func.func @transform_10(%arg0: i32) -> (i32, i32) {
    %c0_i32 = arith.constant 0 : i32
    %c0_i32_0 = arith.constant 0 : i32
    %c0_i32_1 = arith.constant 0 : i32
    return %c0_i32, %c0_i32_0 : i32, i32
  }
  func.func @transform_11(%arg0: i32) -> (i32, i32) {
    %c0_i32 = arith.constant 0 : i32
    %c0_i32_0 = arith.constant 0 : i32
    %c0_i32_1 = arith.constant 0 : i32
    return %c0_i32, %c0_i32_0 : i32, i32
  }
  func.func @transform_12(%arg0: i32) -> (i32, i32) {
    %c0_i32 = arith.constant 0 : i32
    %c0_i32_0 = arith.constant 0 : i32
    %c0_i32_1 = arith.constant 0 : i32
    return %c0_i32, %c0_i32_0 : i32, i32
  }
  func.func @transform_13(%arg0: i32) -> (i32, i32) {
    %c0_i32 = arith.constant 0 : i32
    %c0_i32_0 = arith.constant 0 : i32
    %c0_i32_1 = arith.constant 0 : i32
    return %c0_i32, %c0_i32_0 : i32, i32
  }
  func.func @transform_14(%arg0: i32) -> (i32, i32) {
    %c0_i32 = arith.constant 0 : i32
    %c0_i32_0 = arith.constant 0 : i32
    %c0_i32_1 = arith.constant 0 : i32
    return %c0_i32, %c0_i32_0 : i32, i32
  }
  func.func @transform_15(%arg0: i32) -> (i32, i32, i32) {
    %c0_i32 = arith.constant 0 : i32
    %c0_i32_0 = arith.constant 0 : i32
    %c0_i32_1 = arith.constant 0 : i32
    return %c0_i32, %arg0, %c0_i32_0 : i32, i32, i32
  }
}

</mosaic_0001>

<bundles_post_ra>
// kernel: mul.12
= control target key start
LH: loop header
LB: loop body
LE: loop exit
PB: predicated region body
PF: predicated region fallthrough
CT: control target
= control target key end

     0   :  { %s34_s0 = inlined_call_operand.vmem [shape: f32[40], index: 0, kind: input, shape index: {}]   ;;  %s35_s1 = inlined_call_operand.vmem [shape: f32[40], index: 1, kind: input, shape index: {}]   ;;  %s36_s2 = inlined_call_operand.vmem [shape: f32[40], index: 2, kind: output, shape index: {}]  }
   0x1   :  { %v3_v0 = vld [vmem:[%s34_s0] sm:$0x1] }
   0x2   :  { %v4_v1 = vld [vmem:[%s35_s1] sm:$0x1] }
   0x3   :  { %v7_v2 = vmul.f32 %v4_v1, %v3_v0 }
   0x5   :  { %9 = vst [vmem:[%s36_s2] sm:$0x1] %v7_v2 }

// kernel: _forward_device.1
= control target key start
LH: loop header
LB: loop body
LE: loop exit
PB: predicated region body
PF: predicated region fallthrough
CT: control target
= control target key end

     0   :  { %v59_v0 = vlaneseq  ;;  %v1031_v1 = vmov 0   ;;  %v1032_v2 = vmov 1966171168   ;;  %v1033_v27 = vmov 0.0   ;;  %s1488_s1 = inlined_call_operand.vmem [shape: s32[8,1], index: 1, kind: input, shape index: {}]   ;;  %s1489_s2 = inlined_call_operand.vmem [shape: f32[8,1], index: 2, kind: input, shape index: {}]   ;;  %s1490_s0 = inlined_call_operand.vmem [shape: f32[8,3,54], index: 0, kind: input, shape index: {}]   ;;  %s1491_s6 = inlined_call_operand.vmem [shape: f32[24,54], index: 6, kind: input, shape index: {}]   ;;  %s1492_s5 = inlined_call_operand.vmem [shape: f32[24,54], index: 5, kind: input, shape index: {}]   ;;  %s1493_s3 = inlined_call_operand.vmem [shape: f32[24,54], index: 3, kind: input, shape index: {}]   ;;  %s1494_s4 = inlined_call_operand.vmem [shape: f32[24,54], index: 4, kind: input, shape index: {}]   ;;  %s1495_s9 = inlined_call_operand.vmem [shape: f32[54,128], index: 9, kind: input, shape index: {}]   ;;  %s1496_s11 = inlined_call_operand.vmem [shape: f32[128,54], index: 11, kind: input, shape index: {}]   ;;  %s1497_s7 = inlined_call_operand.vmem [shape: f32[1,54], index: 7, kind: input, shape index: {}]   ;;  %s1498_s8 = inlined_call_operand.vmem [shape: f32[1,54], index: 8, kind: input, shape index: {}]   ;;  %s1499_s10 = inlined_call_operand.vmem [shape: f32[1,128], index: 10, kind: input, shape index: {}]   ;;  %s1500_s12 = inlined_call_operand.vmem [shape: f32[1,54], index: 12, kind: input, shape index: {}]   ;;  %s1501_s13 = inlined_call_operand.vmem [shape: f32[1,54], index: 13, kind: input, shape index: {}]   ;;  %s1502_s14 = inlined_call_operand.vmem [shape: f32[1,54], index: 14, kind: input, shape index: {}]   ;;  %s1503_s15 = inlined_call_operand.vmem [shape: f32[3,8,54], index: 15, kind: output, shape index: {}]  }
   0x1   :  { %990 = vset.pattern.permute.xlu0 %v1031_v1  ;;  %v63_v3 = vunpack.c.l.s4 %v1032_v2  ;;  %991 = vset.pattern.permute.xlu1 %v1031_v1  ;;  %v1121_v4 = vld [vmem:[%s1488_s1] sm:$0xff]  ;;  %vm214_vm9 = vcmask 436224   ;;  %v54_v59 = vld [vmem:[%s1490_s0 + $0x10] sm:$0x7]  ;;  %v52_v63 = vld [vmem:[%s1490_s0 + $0x8] sm:$0x7] }
   0x2   :  { %v1123_v5 = vshrl.u32 %v59_v0, 7  ;;  %v61_v7 = vcombine.high %v1121_v4, %v1121_v4  ;;  %v271_v52 = vld [vmem:[%s1489_s2] sm:$0xff]  ;;  %vm395_vm8 = vcmp.gt.s32.totalorder %v1121_v4, 0  ;;  %vm409_vm15 = vcmask 1041409  }
   0x3   :  { %v64_v6 = vunpack.c.0.s8 %v63_v3  ;;  %v396_v54 = vsel %vm395_vm8, 1, %v1031_v1  ;;  %v1182_v55 = vld [vmem:[%s1490_s0] sm:$0x7]  ;;  %v51_v0 = vld [vmem:[%s1490_s0 + $0x4] sm:$0x7]  ;;  %vm421_vm8 = vcmask 1047559  }
   0x4   :  { %v112_v10 = vsub.s32 0, %v1123_v5 }
   0x5   :  { %v67_v8 = vsub.s32 %v64_v6, %v1123_v5 }
   0x7   :  { %v68_v9 = vrot.slane %v1121_v4, %v67_v8  ;;  %v75_v11 = vrot.slane %v61_v7, %v67_v8 }
   0x9   :  { %v84_v12 = vrot.slane %v68_v9, %v67_v8  ;;  %v76_v13 = vcombine.high %v68_v9, %v68_v9  ;;  %v91_v14 = vrot.slane %v75_v11, %v67_v8  ;;  %v77_v15 = vcombine.high %v75_v11, %v75_v11 }
   0xb   :  { %v113_v16 = vrot.slane %v84_v12, %v112_v10  ;;  %v98_v17 = vrot.slane %v76_v13, %v67_v8  ;;  %v106_v18 = vcombine.high %v84_v12, %v84_v12  ;;  %v129_v19 = vrot.slane %v91_v14, %v112_v10 }
   0xc   :  { %v105_v20 = vrot.slane %v77_v15, %v67_v8  ;;  %v107_v31 = vcombine.high %v91_v14, %v91_v14 }
   0xd   :  { %vm1131_vm0 = vcmp.lt.s32.totalorder %v1123_v5, %v113_v16  ;;  %v117_v22 = vrot.slane %v98_v17, %v112_v10  ;;  %v121_v23 = vrot.slane %v106_v18, %v112_v10  ;;  %vm146_vm1 = vcmp.lt.s32.totalorder %v1123_v5, %v129_v19  ;;  %v472_v16 = vld [vmem:[%s1491_s6 + $0x10] sm:$0xff] }
   0xe   :  { %v150_v24 = vsel %vm1131_vm0, 1, %v1031_v1  ;;  %v133_v26 = vrot.slane %v105_v20, %v112_v10  ;;  %v154_v30 = vsel %vm146_vm1, 1, %v1031_v1  ;;  %v108_v33 = vcombine.high %v98_v17, %v98_v17 }
   0xf   :  { %300 = vperm.xlu0 %990, %v150_v24   ;;  %vm1140_vm2 = vcmp.lt.s32.totalorder %v1123_v5, %v117_v22  ;;  %vm144_vm3 = vcmp.lt.s32.totalorder %v1123_v5, %v121_v23  ;;  %v843_v34 = vsel %vm146_vm1, 1.0, %v1033_v27  ;;  %v109_v35 = vcombine.high %v105_v20, %v105_v20  ;;  %v471_v24 = vld [vmem:[%s1491_s6 + $0x8] sm:$0xff] }
  0x10   :  { %v840_v28 = vsel %vm1140_vm2, 1.0, %v1033_v27  ;;  %v841_v29 = vsel %vm144_vm3, 1.0, %v1033_v27  ;;  %vm147_vm4 = vcmp.lt.s32.totalorder %v1123_v5, %v133_v26  ;;  %v152_v36 = vsel %vm144_vm3, 1, %v1031_v1 }
  0x11   :  { %v992_v32 = vpack.i.bf16 %v841_v29, %v840_v28  ;;  %v151_v37 = vsel %vm1140_vm2, 1, %v1031_v1  ;;  %v844_v38 = vsel %vm147_vm4, 1.0, %v1033_v27  ;;  %v137_v39 = vrot.slane %v107_v31, %v112_v10  ;;  %v55_v31 = vld [vmem:[%s1490_s0 + $0x14] sm:$0x7] }
  0x12   :  { %v125_v40 = vrot.slane %v108_v33, %v112_v10  ;;  %v141_v41 = vrot.slane %v109_v35, %v112_v10  ;;  %v997_v42 = vpack.i.bf16 %v844_v38, %v843_v34  ;;  %v155_v43 = vsel %vm147_vm4, 1, %v1031_v1 }
  0x13   :  { %993 = vperm.xlu1 %991, %v992_v32   ;;  %312 = vperm.xlu0 %990, %v154_v30   ;;  %vm148_vm5 = vcmp.lt.s32.totalorder %v1123_v5, %v137_v39  ;;  %v839_v44 = vsel %vm1131_vm0, 1.0, %v1033_v27  ;;  %v475_v32 = vadd.f32 1e-05, %v472_v16  ;;  %vm411_vm2 = vcmask 1042434  }
  0x14   :  { %vm145_vm6 = vcmp.lt.s32.totalorder %v1123_v5, %v125_v40  ;;  %vm149_vm7 = vcmp.lt.s32.totalorder %v1123_v5, %v141_v41  ;;  %v156_v45 = vsel %vm148_vm5, 1, %v1031_v1  ;;  %v845_v46 = vsel %vm148_vm5, 1.0, %v1033_v27 }
  0x15   :  { %v153_v47 = vsel %vm145_vm6, 1, %v1031_v1  ;;  %v842_v48 = vsel %vm145_vm6, 1.0, %v1033_v27  ;;  %v846_v49 = vsel %vm149_vm7, 1.0, %v1033_v27  ;;  %v157_v53 = vsel %vm149_vm7, 1, %v1031_v1  ;;  %v470_v1 = vld [vmem:[%s1491_s6] sm:$0xff] }
  0x16   :  { %v1002_v50 = vpack.i.bf16 %v842_v48, %v839_v44  ;;  %v1007_v51 = vpack.i.bf16 %v846_v49, %v845_v46  ;;  %v473_v9 = vadd.f32 1e-05, %v470_v1  ;;  %v474_v40 = vadd.f32 1e-05, %v471_v24 }
  0x17   :  { %306 = vperm.xlu1 %991, %v152_v36   ;;  %303 = vperm.xlu0 %990, %v151_v37   ;;  %vm413_vm3 = vcmask 1043459   ;;  %vm415_vm4 = vcmask 1044484   ;;  %vm417_vm6 = vcmask 1045509   ;;  %vm419_vm7 = vcmask 1046534  }
  0x18   :  { %1013 = vrsqrt.f32 %v473_v9 }
  0x19   :  { %1015 = vrsqrt.f32 %v475_v32 }
  0x1a   :  { %1017 = vrsqrt.f32 %v474_v40 }
  0x1b   :  { %998 = vperm.xlu1 %991, %v997_v42   ;;  %315 = vperm.xlu0 %990, %v155_v43  }
  0x1f   :  { %318 = vperm.xlu1 %991, %v156_v45   ;;  %309 = vperm.xlu0 %990, %v153_v47  }
  0x22   :  { %v1218_v1 = vpop.eup %1013 }
  0x23   :  { %1003 = vperm.xlu1 %991, %v1002_v50   ;;  %1008 = vperm.xlu0 %990, %v1007_v51  }
  0x27   :  { %274 = vperm.xlu0 %990, %v271_v52   ;;  %321 = vperm.xlu1 %991, %v157_v53  }
  0x2b   :  { %398 = vperm.xlu1 %991, %v396_v54  }
  0x8e   :  { %v301_v56 = vpop.permute.xlu0 %300 }
  0x8f   :  { %vm323_vm10 = vcmp.eq.s32.totalorder %v301_v56, 1 }
  0x90   :  { %v331_v57 = vsel %vm323_vm10, %v1182_v55, -1e+30  ;;  %vm494_vm10 = vcmask 441344  }
  0x91   :  { %v339_v58 = vsel %vm214_vm9, %v331_v57, -inf }
  0x92   :  { %v340_v60 = vrot.slane %v339_v58, 4  ;;  %v994_v61 = vpop.permute.xlu1 %993  ;;  %v313_v62 = vpop.permute.xlu0 %312 }
  0x93   :  { %v996_v2 = vunpack.i.h.bf16 %v994_v61  ;;  %v995_v3 = vunpack.i.l.bf16 %v994_v61  ;;  %vm327_vm11 = vcmp.eq.s32.totalorder %v313_v62, 1 }
  0x94   :  { %v341_v4 = vmax.f32 %v339_v58, %v340_v60  ;;  %v335_v5 = vsel %vm327_vm11, %v54_v59, -1e+30  ;;  %vm1035_vm11 = vmmov 0  }
  0x95   :  { %v367_v6 = vsel %vm214_vm9, %v335_v5, -inf  ;;  %v208_v7 = vmul.f32 %v996_v2, %v52_v63  ;;  %v207_v8 = vmul.f32 %v995_v3, %v51_v0  ;;  %902 = vmatprep.mubr.msk.f32.mxu0 %vm1035_vm11, %v1033_v27  ;;  %943 = vmatprep.mubr.msk.f32.mxu1 %vm1035_vm11, %v1033_v27 }
  0x96   :  { %v342_v10 = vrot.slane %v341_v4, 2  ;;  %v368_v11 = vrot.slane %v367_v6, 4  ;;  %v307_v12 = vpop.permute.xlu1 %306  ;;  %v304_v13 = vpop.permute.xlu0 %303 }
  0x97   :  { %v229_v14 = vsel %vm214_vm9, %v208_v7, 0.0  ;;  %vm325_vm12 = vcmp.eq.s32.totalorder %v307_v12, 1  ;;  %v222_v15 = vsel %vm214_vm9, %v207_v8, 0.0  ;;  %vm324_vm13 = vcmp.eq.s32.totalorder %v304_v13, 1 }
  0x98   :  { %v343_v17 = vmax.f32 %v341_v4, %v342_v10  ;;  %v369_v18 = vmax.f32 %v367_v6, %v368_v11  ;;  %v230_v19 = vrot.slane %v229_v14, 4  ;;  %v333_v20 = vsel %vm325_vm12, %v52_v63, -1e+30  ;;  %v53_v6 = vld [vmem:[%s1490_s0 + $0xc] sm:$0x7] }
  0x99   :  { %v353_v21 = vsel %vm214_vm9, %v333_v20, -inf  ;;  %v223_v22 = vrot.slane %v222_v15, 4  ;;  %v332_v23 = vsel %vm324_vm13, %v51_v0, -1e+30  ;;  %v56_v0 = vld [vmem:[%s1490_s0 + $0x18] sm:$0x7] }
  0x9a   :  { %v370_v25 = vrot.slane %v369_v18, 2  ;;  %v231_v26 = vadd.f32 %v230_v19, %v229_v14  ;;  %v354_v28 = vrot.slane %v353_v21, 4  ;;  %v999_v29 = vpop.permute.xlu1 %998  ;;  %v316_v30 = vpop.permute.xlu0 %315  ;;  %v346_v34 = vsel %vm214_vm9, %v332_v23, -inf }
  0x9b   :  { %v224_v33 = vadd.f32 %v223_v22, %v222_v15  ;;  %v1001_v35 = vunpack.i.h.bf16 %v999_v29  ;;  %v1000_v36 = vunpack.i.l.bf16 %v999_v29  ;;  %v344_v37 = vrot.slane %v343_v17, 1  ;;  %v1226_v23 = vpop.eup %1015 }
  0x9c   :  { %v232_v38 = vrot.slane %v231_v26, 2  ;;  %v355_v39 = vmax.f32 %v353_v21, %v354_v28  ;;  %v347_v42 = vrot.slane %v346_v34, 4  ;;  %v371_v45 = vmax.f32 %v369_v18, %v370_v25 }
  0x9d   :  { %v225_v41 = vrot.slane %v224_v33, 2  ;;  %v210_v43 = vmul.f32 %v1000_v36, %v54_v59  ;;  %v211_v44 = vmul.f32 %v1001_v35, %v55_v31  ;;  %vm328_vm14 = vcmp.eq.s32.totalorder %v316_v30, 1 }
  0x9e   :  { %v356_v46 = vrot.slane %v355_v39, 2  ;;  %v319_v47 = vpop.permute.xlu1 %318  ;;  %v233_v48 = vadd.f32 %v232_v38, %v231_v26  ;;  %v348_v49 = vmax.f32 %v346_v34, %v347_v42  ;;  %v310_v52 = vpop.permute.xlu0 %309  ;;  %v345_v56 = vmax.f32 %v343_v17, %v344_v37 }
  0x9f   :  { %v243_v50 = vsel %vm214_vm9, %v210_v43, 0.0  ;;  %v250_v51 = vsel %vm214_vm9, %v211_v44, 0.0  ;;  %v226_v53 = vadd.f32 %v225_v41, %v224_v33  ;;  %v336_v59 = vsel %vm328_vm14, %v55_v31, -1e+30  ;;  %v1233_v33 = vpop.eup %1017 }
  0xa0   :  { %v244_v54 = vrot.slane %v243_v50, 4  ;;  %v349_v57 = vrot.slane %v348_v49, 2  ;;  %v251_v58 = vrot.slane %v250_v51, 4  ;;  %v372_v60 = vrot.slane %v371_v45, 1 }
  0xa1   :  { %v357_v61 = vmax.f32 %v355_v39, %v356_v46  ;;  %v374_v63 = vsel %vm214_vm9, %v336_v59, -inf  ;;  %v234_v2 = vrot.slane %v233_v48, 1  ;;  %v227_v8 = vrot.slane %v226_v53, 1 }
  0xa2   :  { %v245_v62 = vadd.f32 %v244_v54, %v243_v50  ;;  %v350_v3 = vmax.f32 %v348_v49, %v349_v57  ;;  %v252_v4 = vadd.f32 %v251_v58, %v250_v51  ;;  %v375_v5 = vrot.slane %v374_v63, 4  ;;  %v1004_v7 = vpop.permute.xlu1 %1003  ;;  %v1009_v14 = vpop.permute.xlu0 %1008 }
  0xa3   :  { %vm329_vm0 = vcmp.eq.s32.totalorder %v319_v47, 1  ;;  %vm326_vm1 = vcmp.eq.s32.totalorder %v310_v52, 1  ;;  %v358_v15 = vrot.slane %v357_v61, 1  ;;  %v1006_v18 = vunpack.i.h.bf16 %v1004_v7 }
  0xa4   :  { %v246_v9 = vrot.slane %v245_v62, 2  ;;  %v351_v10 = vrot.slane %v350_v3, 1  ;;  %v253_v11 = vrot.slane %v252_v4, 2  ;;  %v376_v12 = vmax.f32 %v374_v63, %v375_v5 }
  0xa5   :  { %v337_v13 = vsel %vm329_vm0, %v56_v0, -1e+30  ;;  %v334_v17 = vsel %vm326_vm1, %v53_v6, -1e+30  ;;  %v1224_v19 = vmax.f32 %v371_v45, %v372_v60  ;;  %v1005_v26 = vunpack.i.l.bf16 %v1004_v7  ;;  %v57_v60 = vld [vmem:[%s1490_s0 + $0x1c] sm:$0x7] }
  0xa6   :  { %v381_v16 = vsel %vm214_vm9, %v337_v13, -inf  ;;  %v247_v20 = vadd.f32 %v246_v9, %v245_v62  ;;  %v254_v21 = vadd.f32 %v253_v11, %v252_v4  ;;  %v377_v24 = vrot.slane %v376_v12, 2  ;;  %v1239_v42 = vpop.permute.xlu0 %274 }
  0xa7   :  { %v382_v22 = vrot.slane %v381_v16, 4  ;;  %v360_v25 = vsel %vm214_vm9, %v334_v17, -inf  ;;  %v209_v28 = vmul.f32 %v1006_v18, %v53_v6  ;;  %v1229_v29 = vadd.f32 %v234_v2, %v233_v48 }
  0xa8   :  { %v1231_v30 = vadd.f32 %v227_v8, %v226_v53  ;;  %v352_v31 = vmax.f32 %v350_v3, %v351_v10  ;;  %v1235_v34 = vmax.f32 %v357_v61, %v358_v15  ;;  %v361_v35 = vrot.slane %v360_v25, 4 }
  0xa9   :  { %v383_v32 = vmax.f32 %v381_v16, %v382_v22  ;;  %v206_v36 = vmul.f32 %v1005_v26, %v1182_v55  ;;  %v236_v37 = vsel %vm214_vm9, %v209_v28, 0.0  ;;  %v248_v38 = vrot.slane %v247_v20, 1 }
  0xaa   :  { %v255_v39 = vrot.slane %v254_v21, 1  ;;  %v237_v41 = vrot.slane %v236_v37, 4  ;;  %v1241_v43 = vmax.f32 %v376_v12, %v377_v24  ;;  %v362_v44 = vmax.f32 %v360_v25, %v361_v35 }
  0xab   :  { %v384_v40 = vrot.slane %v383_v32, 2  ;;  %v215_v45 = vsel %vm214_vm9, %v206_v36, 0.0  ;;  %v1010_v46 = vunpack.i.l.bf16 %v1009_v14  ;;  %v410_v47 = vsel %vm409_vm15, %v352_v31, %v345_v56 }
  0xac   :  { %v216_v49 = vrot.slane %v215_v45, 4  ;;  %v238_v55 = vadd.f32 %v237_v41, %v236_v37  ;;  %v363_v50 = vrot.slane %v362_v44, 2  ;;  %v1011_v51 = vunpack.i.h.bf16 %v1009_v14 }
  0xad   :  { %v1245_v48 = vmax.f32 %v383_v32, %v384_v40  ;;  %v212_v52 = vmul.f32 %v1010_v46, %v56_v0  ;;  %v276_v53 = vrot.slane %v1239_v42, 1  ;;  %v1248_v54 = vadd.f32 %v248_v38, %v247_v20  ;;  %v322_v0 = vpop.permute.xlu1 %321 }
  0xae   :  { %v1250_v57 = vadd.f32 %v255_v39, %v254_v21  ;;  %v217_v58 = vadd.f32 %v216_v49, %v215_v45  ;;  %v239_v59 = vrot.slane %v238_v55, 2  ;;  %v379_v56 = vrot.slane %v1241_v43, 1 }
  0xaf   :  { %v364_v61 = vmax.f32 %v362_v44, %v363_v50  ;;  %v257_v62 = vsel %vm214_vm9, %v212_v52, 0.0  ;;  %v277_v63 = vrot.slane %v1239_v42, 2  ;;  %v386_v2 = vrot.slane %v1245_v48, 1 }
  0xb0   :  { %v218_v3 = vrot.slane %v217_v58, 2  ;;  %v240_v4 = vadd.f32 %v239_v59, %v238_v55  ;;  %v258_v5 = vrot.slane %v257_v62, 4  ;;  %v278_v7 = vrot.slane %v1239_v42, 3 }
  0xb1   :  { %v365_v6 = vrot.slane %v364_v61, 1  ;;  %v292_v8 = vmul.f32 %v276_v53, %v1231_v30  ;;  %v213_v9 = vmul.f32 %v1011_v51, %v57_v60  ;;  %vm330_vm5 = vcmp.eq.s32.totalorder %v322_v0, 1 }
  0xb2   :  { %v219_v10 = vadd.f32 %v218_v3, %v217_v58  ;;  %v241_v11 = vrot.slane %v240_v4, 1  ;;  %v259_v12 = vadd.f32 %v258_v5, %v257_v62  ;;  %v279_v13 = vrot.slane %v1239_v42, 4 }
  0xb3   :  { %v293_v14 = vmul.f32 %v277_v63, %v1229_v29  ;;  %v264_v15 = vsel %vm214_vm9, %v213_v9, 0.0  ;;  %v338_v16 = vsel %vm330_vm5, %v57_v60, -1e+30  ;;  %v366_v22 = vmax.f32 %v364_v61, %v365_v6 }
  0xb4   :  { %v220_v17 = vrot.slane %v219_v10, 1  ;;  %v242_v18 = vadd.f32 %v241_v11, %v240_v4  ;;  %v260_v20 = vrot.slane %v259_v12, 2  ;;  %v265_v21 = vrot.slane %v264_v15, 4 }
  0xb5   :  { %v433_v24 = vrot.slane %v292_v8, 7  ;;  %v388_v25 = vsel %vm214_vm9, %v338_v16, -inf  ;;  %v280_v26 = vrot.slane %v1239_v42, 5  ;;  %v435_v36 = vrot.slane %v293_v14, 6 }
  0xb6   :  { %v221_v28 = vadd.f32 %v220_v17, %v219_v10  ;;  %v261_v31 = vadd.f32 %v260_v20, %v259_v12  ;;  %v266_v32 = vadd.f32 %v265_v21, %v264_v15  ;;  %v389_v35 = vrot.slane %v388_v25, 4 }
  0xb7   :  { %v281_v37 = vrot.slane %v1239_v42, 6  ;;  %v294_v38 = vmul.f32 %v278_v7, %v242_v18  ;;  %v295_v39 = vmul.f32 %v279_v13, %v1248_v54  ;;  %v296_v45 = vmul.f32 %v280_v26, %v1250_v57 }
  0xb8   :  { %v262_v40 = vrot.slane %v261_v31, 1  ;;  %v291_v41 = vmul.f32 %v1239_v42, %v221_v28  ;;  %v267_v44 = vrot.slane %v266_v32, 2  ;;  %v456_v46 = vsel %vm409_vm15, %v1231_v30, %v221_v28 }
  0xb9   :  { %v390_v49 = vmax.f32 %v388_v25, %v389_v35  ;;  %v412_v55 = vsel %vm411_vm2, %v1235_v34, %v410_v47  ;;  %v437_v50 = vrot.slane %v294_v38, 5  ;;  %v439_v62 = vrot.slane %v295_v39, 4  ;;  %v488_v38 = vld [vmem:[%s1494_s4] sm:$0xff]  ;;  %v489_v39 = vld [vmem:[%s1494_s4 + $0x8] sm:$0xff] }
  0xba   :  { %v263_v51 = vadd.f32 %v262_v40, %v261_v31  ;;  %v268_v52 = vadd.f32 %v267_v44, %v266_v32  ;;  %v414_v53 = vsel %vm413_vm3, %v366_v22, %v412_v55  ;;  %v434_v58 = vsel %vm409_vm15, %v433_v24, %v291_v41  ;;  %v484_v24 = vld [vmem:[%s1493_s3 + $0x10] sm:$0xff]  ;;  %v482_v31 = vld [vmem:[%s1493_s3] sm:$0xff]  ;;  %v483_v32 = vld [vmem:[%s1493_s3 + $0x8] sm:$0xff] }
  0xbb   :  { %v391_v59 = vrot.slane %v390_v49, 2  ;;  %v416_v60 = vsel %vm415_vm4, %v1224_v19, %v414_v53  ;;  %v436_v61 = vsel %vm411_vm2, %v435_v36, %v434_v58  ;;  %v441_v3 = vrot.slane %v296_v45, 3 }
  0xbc   :  { %v269_v63 = vrot.slane %v268_v52, 1  ;;  %v297_v30 = vmul.f32 %v281_v37, %v263_v51  ;;  %v438_v0 = vsel %vm413_vm3, %v437_v50, %v436_v61  ;;  %v380_v34 = vmax.f32 %v1241_v43, %v379_v56 }
  0xbd   :  { %v392_v47 = vmax.f32 %v390_v49, %v391_v59  ;;  %v440_v4 = vsel %vm415_vm4, %v439_v62, %v438_v0  ;;  %v457_v5 = vsel %vm411_vm2, %v1229_v29, %v456_v46  ;;  %v282_v7 = vrot.slane %v1239_v42, 7  ;;  %v466_v29 = vld [vmem:[%s1492_s5 + $0x10] sm:$0xff]  ;;  %v399_v42 = vpop.permute.xlu1 %398 }
  0xbe   :  { %v270_v6 = vadd.f32 %v269_v63, %v268_v52  ;;  %v442_v19 = vsel %vm417_vm6, %v441_v3, %v440_v4  ;;  %v458_v8 = vsel %vm413_vm3, %v242_v18, %v457_v5  ;;  %v418_v10 = vsel %vm417_vm6, %v380_v34, %v416_v60  ;;  %v555_v4 = vld [vmem:[%s1495_s9] sm:$0xff]  ;;  %v556_v5 = vld [vmem:[%s1495_s9 + $0x8] sm:$0xff] }
  0xbf   :  { %v393_v9 = vrot.slane %v392_v47, 1  ;;  %v443_v11 = vrot.slane %v297_v30, 2  ;;  %v459_v43 = vsel %vm415_vm4, %v1248_v54, %v458_v8  ;;  %v387_v56 = vmax.f32 %v1245_v48, %v386_v2  ;;  %v464_v54 = vld [vmem:[%s1492_s5] sm:$0xff]  ;;  %v465_v48 = vld [vmem:[%s1492_s5 + $0x8] sm:$0xff] }
  0xc0   :  { %v298_v12 = vmul.f32 %v282_v7, %v270_v6  ;;  %v460_v13 = vsel %vm417_vm6, %v1250_v57, %v459_v43  ;;  %vm400_vm9 = vcmp.eq.s32.totalorder %v399_v42, 1  ;;  %v953_v7 = vpack.c.bf16 %v556_v5, %v555_v4  ;;  %v561_v43 = vld [vmem:[%s1495_s9 + $0x30] sm:$0x3f] }
  0xc1   :  { %v394_v14 = vmax.f32 %v392_v47, %v393_v9  ;;  %v444_v15 = vsel %vm419_vm7, %v443_v11, %v442_v19  ;;  %v461_v16 = vsel %vm419_vm7, %v263_v51, %v460_v13  ;;  %v420_v2 = vsel %vm419_vm7, %v387_v56, %v418_v10  ;;  %v558_v19 = vld [vmem:[%s1495_s9 + $0x18] sm:$0xff]  ;;  %v559_v9 = vld [vmem:[%s1495_s9 + $0x20] sm:$0xff]  ;;  %v560_v10 = vld [vmem:[%s1495_s9 + $0x28] sm:$0xff] }
  0xc2   :  { %v445_v17 = vrot.slane %v298_v12, 1  ;;  %v462_v18 = vsel %vm421_vm8, %v270_v6, %v461_v16  ;;  %v1034_v47 = vmov 0.0|0.0   ;;  %v557_v6 = vld [vmem:[%s1495_s9 + $0x10] sm:$0xff]  ;;  %v959_v11 = vpack.c.bf16 %v560_v10, %v559_v9  ;;  %v665_v56 = vld [vmem:[%s1496_s11] sm:$0xff]  ;;  %v668_v13 = vld [vmem:[%s1496_s11 + $0x18] sm:$0xff] }
  0xc3   :  { %v422_v57 = vsel %vm421_vm8, %v394_v14, %v420_v2  ;;  %v469_v20 = vsub.f32 %v462_v18, %v466_v29  ;;  %952 = vmatprep.subr.bf16.mxu0 %v1034_v47  ;;  %961 = vmatprep.subr.bf16.mxu1 %v1034_v47  ;;  %v956_v8 = vpack.c.bf16 %v558_v19, %v557_v6  ;;  %vm578_vm12 = vcmask 1045504   ;;  %v666_v29 = vld [vmem:[%s1496_s11 + $0x8] sm:$0xff]  ;;  %v667_v42 = vld [vmem:[%s1496_s11 + $0x10] sm:$0xff]  ;;  %v672_v2 = vld [vmem:[%s1496_s11 + $0x38] sm:$0xff] }
  0xc4   :  { %v424_v21 = vsel %vm400_vm9, %v422_v57, 0.0  ;;  %v446_v22 = vsel %vm421_vm8, %v445_v17, %v444_v15  ;;  %954 = vmatpush3.bf16.msra.mxu0 %v953_v7  ;;  %v962_v12 = vpack.c.bf16 %v666_v29, %v665_v56  ;;  %v965_v14 = vpack.c.bf16 %v668_v13, %v667_v42  ;;  %v669_v15 = vld [vmem:[%s1496_s11 + $0x20] sm:$0xff]  ;;  %v670_v16 = vld [vmem:[%s1496_s11 + $0x28] sm:$0xff] }
  0xc5   :  { %v467_v25 = vsub.f32 %v424_v21, %v464_v54  ;;  %v468_v26 = vsub.f32 %v446_v22, %v465_v48  ;;  %v481_v28 = vmul.f32 %v1226_v23, %v469_v20  ;;  %v490_v23 = vld [vmem:[%s1494_s4 + $0x10] sm:$0xff]  ;;  %955 = vmatprep.subr.bf16.mxu0 %v1034_v47  ;;  %v968_v54 = vpack.c.bf16 %v670_v16, %v669_v15  ;;  %v673_v18 = vld [vmem:[%s1496_s11 + $0x40] sm:$0xff]  ;;  %v674_v57 = vld [vmem:[%s1496_s11 + $0x48] sm:$0xff] }
  0xc6   :  { %963 = vmatpush3.bf16.msra.mxu1 %v962_v12  ;;  %v671_v48 = vld [vmem:[%s1496_s11 + $0x30] sm:$0xff]  ;;  %v974_v20 = vpack.c.bf16 %v674_v57, %v673_v18  ;;  %v676_v22 = vld [vmem:[%s1496_s11 + $0x58] sm:$0xff]  ;;  %v854_v56 = vld [vmem:[%s1500_s12] ss:$0 sm:$0xff] }
  0xc7   :  { %v479_v35 = vmul.f32 %v1218_v1, %v467_v25  ;;  %v487_v36 = vmul.f32 %v484_v24, %v481_v28  ;;  %v480_v37 = vmul.f32 %v1233_v33, %v468_v26  ;;  %964 = vmatprep.subr.bf16.mxu1 %v1034_v47  ;;  %v971_v17 = vpack.c.bf16 %v672_v2, %v671_v48  ;;  %v675_v21 = vld [vmem:[%s1496_s11 + $0x50] sm:$0xff]  ;;  %v677_v25 = vld [vmem:[%s1496_s11 + $0x60] sm:$0xff]  ;;  %v678_v26 = vld [vmem:[%s1496_s11 + $0x68] sm:$0xff] }
  0xc8   :  { %957 = vmatpush3.bf16.msra.mxu0 %v956_v8  ;;  %v977_v24 = vpack.c.bf16 %v676_v22, %v675_v21  ;;  %v980_v28 = vpack.c.bf16 %v678_v26, %v677_v25 }
  0xc9   :  { %v485_v40 = vmul.f32 %v482_v31, %v479_v35  ;;  %v486_v41 = vmul.f32 %v483_v32, %v480_v37  ;;  %v1333_v1 = vadd.f32 %v490_v23, %v487_v36  ;;  %958 = vmatprep.subr.bf16.mxu0 %v1034_v47 }
  0xca   :  { %966 = vmatpush3.bf16.msra.mxu1 %v965_v14 }
  0xcb   :  { %v1331_v44 = vadd.f32 %v488_v38, %v485_v40  ;;  %v1335_v33 = vadd.f32 %v489_v39, %v486_v41  ;;  %v501_v49 = vsel %vm494_vm10, %v1333_v1, 0.0  ;;  %967 = vmatprep.subr.bf16.mxu1 %v1034_v47 }
  0xcc   :  { %960 = vmatpush3.bf16.msra.mxu0 %v959_v11 }
  0xcd   :  { %v495_v45 = vsel %vm494_vm10, %v1331_v44, 0.0  ;;  %v498_v46 = vsel %vm494_vm10, %v1335_v33, 0.0  ;;  %900 = vmatprep.subr.mxu0 %v1033_v27 }
  0xce   :  { %496 = vadd.xlane.f32.xlu0 %v495_v45  ;;  %499 = vadd.xlane.f32.xlu1 %v498_v46  ;;  %v847_v45 = vld [vmem:[%s1497_s7] ss:$0 sm:$0xff] }
  0xcf   :  { %969 = vmatpush3.bf16.msra.mxu1 %v968_v54 }
  0xd0   :  { %901 = vmatpush3.msk.msra.mxu0 %vm578_vm12, %v561_v43  ;;  %970 = vmatprep.subr.bf16.mxu1 %v1034_v47 }
  0xd2   :  { %502 = vadd.xlane.f32.xlu0 %v501_v49 }
  0xd3   :  { %972 = vmatpush3.bf16.msra.mxu1 %v971_v17 }
  0xd4   :  { %973 = vmatprep.subr.bf16.mxu1 %v1034_v47 }
  0xd7   :  { %975 = vmatpush3.bf16.msra.mxu1 %v974_v20 }
  0xd8   :  { %976 = vmatprep.subr.bf16.mxu1 %v1034_v47 }
  0xdb   :  { %978 = vmatpush3.bf16.msra.mxu1 %v977_v24 }
  0xdc   :  { %979 = vmatprep.subr.bf16.mxu1 %v1034_v47 }
  0xdf   :  { %981 = vmatpush3.bf16.msra.mxu1 %v980_v28 }
  0xe0   :  { %982 = vmatprep.subr.bf16.mxu1 %v1034_v47 }
 0x15b   :  { %v497_v55 = vpop.xlane.xlu0 %496  ;;  %v500_v50 = vpop.xlane.xlu1 %499 }
 0x15c   :  { %v505_v51 = vmul.f32 0.018518519, %v497_v55  ;;  %v506_v52 = vmul.f32 0.018518519, %v500_v50  ;;  %v848_v55 = vld [vmem:[%s1498_s8] ss:$0 sm:$0xff] }
 0x15e   :  { %v1344_v53 = vsub.f32 %v1331_v44, %v505_v51  ;;  %v1347_v58 = vsub.f32 %v1335_v33, %v506_v52 }
 0x15f   :  { %v503_v59 = vpop.xlane.xlu0 %502 }
 0x160   :  { %v507_v60 = vmul.f32 0.018518519, %v503_v59  ;;  %v511_v61 = vmul.f32 %v1344_v53, %v1344_v53  ;;  %v512_v62 = vmul.f32 %v1347_v58, %v1347_v58 }
 0x162   :  { %v1354_v63 = vsub.f32 %v1333_v1, %v507_v60  ;;  %v514_v30 = vsel %vm494_vm10, %v511_v61, 0.0  ;;  %v517_v0 = vsel %vm494_vm10, %v512_v62, 0.0 }
 0x163   :  { %515 = vadd.xlane.f32.xlu0 %v514_v30  ;;  %518 = vadd.xlane.f32.xlu1 %v517_v0 }
 0x164   :  { %v513_v3 = vmul.f32 %v1354_v63, %v1354_v63 }
 0x166   :  { %v520_v34 = vsel %vm494_vm10, %v513_v3, 0.0  ;;  %v849_v3 = vld [vmem:[%s1499_s10] ss:$0 sm:$0xff] }
 0x167   :  { %521 = vadd.xlane.f32.xlu0 %v520_v34 }
 0x1f0   :  { %v516_v31 = vpop.xlane.xlu0 %515  ;;  %v519_v32 = vpop.xlane.xlu1 %518 }
 0x1f1   :  { %v523_v35 = vmul.f32 0.018518519, %v516_v31  ;;  %v524_v36 = vmul.f32 0.018518519, %v519_v32 }
 0x1f3   :  { %v526_v37 = vadd.f32 1e-05, %v523_v35  ;;  %v527_v38 = vadd.f32 1e-05, %v524_v36 }
 0x1f4   :  { %v522_v23 = vpop.xlane.xlu0 %521 }
 0x1f5   :  { %1019 = vrsqrt.f32 %v526_v37  ;;  %v525_v39 = vmul.f32 0.018518519, %v522_v23 }
 0x1f6   :  { %1021 = vrsqrt.f32 %v527_v38 }
 0x1f7   :  { %v528_v40 = vadd.f32 1e-05, %v525_v39 }
 0x1f9   :  { %1023 = vrsqrt.f32 %v528_v40 }
 0x1ff   :  { %v1020_v41 = vpop.eup %1019 }
 0x200   :  { %v1022_v46 = vpop.eup %1021  ;;  %v532_v49 = vmul.f32 %v1020_v41, %v1344_v53 }
 0x201   :  { %v533_v50 = vmul.f32 %v1022_v46, %v1347_v58  ;;  %v679_v58 = vld [vmem:[%s1496_s11 + $0x70] sm:$0xff] }
 0x202   :  { %v542_v51 = vmul.f32 %v847_v45, %v532_v49 }
 0x203   :  { %v1024_v52 = vpop.eup %1023  ;;  %v543_v59 = vmul.f32 %v847_v45, %v533_v50 }
 0x204   :  { %v552_v60 = vadd.f32 %v848_v55, %v542_v51  ;;  %v534_v61 = vmul.f32 %v1024_v52, %v1354_v63  ;;  %v680_v63 = vld [vmem:[%s1496_s11 + $0x78] sm:$0xff]  ;;  %v855_v52 = vld [vmem:[%s1501_s13] ss:$0 sm:$0xff] }
 0x205   :  { %v553_v62 = vadd.f32 %v848_v55, %v543_v59  ;;  %v983_v0 = vpack.c.bf16 %v680_v63, %v679_v58 }
 0x206   :  { %903 = vmatmul.mubr.msk.f32.vlgmr.msra.gmra.mrb[0].mxu0 %vm494_vm10, %v552_v60  ;;  %v544_v30 = vmul.f32 %v847_v45, %v534_v61  ;;  %v856_v60 = vld [vmem:[%s1502_s14] ss:$0 sm:$0xff] }
 0x207   :  { %905 = vmatprep.mubr.msk.f32.mxu0 %vm1035_vm11, %v1033_v27  ;;  %984 = vmatpush3.bf16.msra.mxu1 %v983_v0 }
 0x208   :  { %v554_v53 = vadd.f32 %v848_v55, %v544_v30 }
 0x20a   :  { %906 = vmatmul.mubr.msk.f32.gmra.mrb[2].mxu0 %vm494_vm10, %v553_v62 }
 0x20b   :  { %908 = vmatprep.mubr.msk.f32.mxu0 %vm1035_vm11, %v1033_v27 }
 0x20e   :  { %909 = vmatmul.mubr.msk.f32.gmra.mrb[4].mxu0 %vm494_vm10, %v554_v53 }
 0x2d9   :  { %v648_v34 = vpop.f32.mrb[0].mxu0 }
 0x2da   :  { %v649_v47 = vadd.f32 %v849_v3, %v648_v34  ;;  %v904_v4 = vpop.f32.mrb[1].mxu0 }
 0x2dc   :  { %v662_v5 = vmax.f32 %v649_v47, 0.0 }
 0x2dd   :  { %v653_v6 = vpop.f32.mrb[2].mxu0 }
 0x2de   :  { %v654_v7 = vadd.f32 %v849_v3, %v653_v6  ;;  %944 = vmatmul.mubr.f32.vlgmr.msra.gmra.mrb[0].mxu1 %v662_v5  ;;  %v907_v19 = vpop.f32.mrb[3].mxu0 }
 0x2df   :  { %946 = vmatprep.mubr.msk.f32.mxu1 %vm1035_vm11, %v1033_v27 }
 0x2e0   :  { %v663_v8 = vmax.f32 %v654_v7, 0.0 }
 0x2e1   :  { %v658_v9 = vpop.f32.mrb[4].mxu0 }
 0x2e2   :  { %v659_v10 = vadd.f32 %v849_v3, %v658_v9  ;;  %v910_v11 = vpop.f32.mrb[5].mxu0  ;;  %947 = vmatmul.mubr.f32.gmra.mrb[2].mxu1 %v663_v8 }
 0x2e3   :  { %949 = vmatprep.mubr.msk.f32.mxu1 %vm1035_vm11, %v1033_v27 }
 0x2e4   :  { %v664_v43 = vmax.f32 %v659_v10, 0.0 }
 0x2e6   :  { %950 = vmatmul.mubr.f32.gmra.mrb[4].mxu1 %v664_v43 }
 0x3b1   :  { %v754_v29 = vpop.f32.mrb[0].mxu1 }
 0x3b2   :  { %v755_v42 = vadd.f32 %v854_v56, %v754_v29  ;;  %v945_v12 = vpop.f32.mrb[1].mxu1 }
 0x3b4   :  { %v768_v13 = vadd.f32 %v755_v42, %v1331_v44 }
 0x3b5   :  { %v759_v14 = vpop.f32.mrb[2].mxu1 }
 0x3b6   :  { %v760_v15 = vadd.f32 %v854_v56, %v759_v14  ;;  %v771_v16 = vsel %vm494_vm10, %v768_v13, 0.0  ;;  %v948_v54 = vpop.f32.mrb[3].mxu1 }
 0x3b7   :  { %772 = vadd.xlane.f32.xlu1 %v771_v16 }
 0x3b8   :  { %v769_v48 = vadd.f32 %v760_v15, %v1335_v33 }
 0x3b9   :  { %v764_v27 = vpop.f32.mrb[4].mxu1 }
 0x3ba   :  { %v765_v2 = vadd.f32 %v854_v56, %v764_v27  ;;  %v951_v17 = vpop.f32.mrb[5].mxu1  ;;  %v774_v18 = vsel %vm494_vm10, %v769_v48, 0.0 }
 0x3bb   :  { %775 = vadd.xlane.f32.xlu0 %v774_v18 }
 0x3bc   :  { %v770_v57 = vadd.f32 %v765_v2, %v1333_v1 }
 0x3be   :  { %v777_v20 = vsel %vm494_vm10, %v770_v57, 0.0 }
 0x3bf   :  { %778 = vadd.xlane.f32.xlu1 %v777_v20 }
 0x444   :  { %v773_v44 = vpop.xlane.xlu1 %772 }
 0x445   :  { %v780_v21 = vmul.f32 0.018518519, %v773_v44 }
 0x447   :  { %v783_v22 = vsub.f32 %v768_v13, %v780_v21 }
 0x448   :  { %v776_v24 = vpop.xlane.xlu0 %775 }
 0x449   :  { %v781_v25 = vmul.f32 0.018518519, %v776_v24  ;;  %v786_v26 = vmul.f32 %v783_v22, %v783_v22 }
 0x44b   :  { %v784_v28 = vsub.f32 %v769_v48, %v781_v25  ;;  %v789_v33 = vsel %vm494_vm10, %v786_v26, 0.0 }
 0x44c   :  { %790 = vadd.xlane.f32.xlu0 %v789_v33  ;;  %v779_v31 = vpop.xlane.xlu1 %778 }
 0x44d   :  { %v782_v32 = vmul.f32 0.018518519, %v779_v31  ;;  %v787_v35 = vmul.f32 %v784_v28, %v784_v28 }
 0x44f   :  { %v785_v36 = vsub.f32 %v770_v57, %v782_v32  ;;  %v792_v37 = vsel %vm494_vm10, %v787_v35, 0.0 }
 0x450   :  { %793 = vadd.xlane.f32.xlu1 %v792_v37 }
 0x451   :  { %v788_v1 = vmul.f32 %v785_v36, %v785_v36 }
 0x453   :  { %v795_v38 = vsel %vm494_vm10, %v788_v1, 0.0 }
 0x454   :  { %796 = vadd.xlane.f32.xlu0 %v795_v38 }
 0x4d9   :  { %v791_v23 = vpop.xlane.xlu0 %790 }
 0x4da   :  { %v798_v39 = vmul.f32 0.018518519, %v791_v23 }
 0x4dc   :  { %v801_v40 = vadd.f32 1e-05, %v798_v39 }
 0x4dd   :  { %v794_v41 = vpop.xlane.xlu1 %793 }
 0x4de   :  { %1025 = vrsqrt.f32 %v801_v40  ;;  %v799_v45 = vmul.f32 0.018518519, %v794_v41 }
 0x4e0   :  { %v802_v46 = vadd.f32 1e-05, %v799_v45 }
 0x4e1   :  { %v797_v49 = vpop.xlane.xlu0 %796 }
 0x4e2   :  { %1027 = vrsqrt.f32 %v802_v46  ;;  %v800_v55 = vmul.f32 0.018518519, %v797_v49 }
 0x4e4   :  { %v803_v50 = vadd.f32 1e-05, %v800_v55 }
 0x4e6   :  { %1029 = vrsqrt.f32 %v803_v50 }
 0x4e8   :  { %v1026_v51 = vpop.eup %1025 }
 0x4e9   :  { %v807_v59 = vmul.f32 %v1026_v51, %v783_v22 }
 0x4eb   :  { %v817_v61 = vmul.f32 %v855_v52, %v807_v59 }
 0x4ec   :  { %v1028_v62 = vpop.eup %1027 }
 0x4ed   :  { %v827_v30 = vadd.f32 %v856_v60, %v817_v61  ;;  %v808_v53 = vmul.f32 %v1028_v62, %v784_v28 }
 0x4ef   :  { %830 = vst.msk [vmem:[%s1503_s15] sm:$0xff] %vm494_vm10, %v827_v30  ;;  %v818_v58 = vmul.f32 %v855_v52, %v808_v53 }
 0x4f0   :  { %v1030_v63 = vpop.eup %1029 }
 0x4f1   :  { %v828_v0 = vadd.f32 %v856_v60, %v818_v58  ;;  %v809_v3 = vmul.f32 %v1030_v63, %v785_v36 }
 0x4f3   :  { %857 = vst.msk [vmem:[%s1503_s15 + $0x8] sm:$0xff] %vm494_vm10, %v828_v0  ;;  %v819_v34 = vmul.f32 %v855_v52, %v809_v3 }
 0x4f5   :  { %v829_v47 = vadd.f32 %v856_v60, %v819_v34 }
 0x4f7   :  { %858 = vst.msk [vmem:[%s1503_s15 + $0x10] sm:$0xff] %vm494_vm10, %v829_v47 }

</bundles_post_ra>
